<compile_context>
chip_gen: v5e
topology: v5e:2x2
jax: 0.10.0
libtpu: 0.0.40
codegen_flags: <defaults>
</compile_context>

<pallas_src>
import jax
import jax.numpy as jnp
from jax.experimental import pallas as pl
from jax.experimental.pallas import tpu as pltpu


def _copy_kernel(x_ref, o_ref):
    # Pure copy of the current VMEM tile (identity forward).
    o_ref[...] = x_ref[...]


_LANE_CANDIDATES = (4096, 2048, 1024, 512, 256, 128)


def _pick_lanes(total):
    """Largest lane width (multiple of 128) that divides `total`, else None."""
    for lanes in _LANE_CANDIDATES:
        if total % lanes == 0:
            return lanes
    return None


def sppffm_forward(x):
    """SPPFFM.forward(x) == x, via a lane-dense tiled Pallas copy kernel.

    NOTE: in production the right answer is simply `return x` (no data
    movement at all); the kernel below exists to exercise the Pallas path
    while staying as close to HBM roofline as a copy can.
    """
    orig_shape = x.shape
    orig_dtype = x.dtype
    total = x.size
    if total == 0:
        return x

    lanes = _pick_lanes(total)
    if lanes is None:
        # Unaligned element count: pad the flat array up to a multiple of 128
        # lanes so the copy stays lane-dense; the tail is sliced off afterwards.
        lanes = 128
        pad = (-total) % lanes
        flat = jnp.pad(x.reshape(-1), (0, pad))
    else:
        pad = 0
        flat = x.reshape(-1)

    rows = flat.size // lanes
    x2d = flat.reshape(rows, lanes)

    # Tile sizing: ~1 MiB per tile buffer.  With one input + one output,
    # each double-buffered, peak VMEM is ~4x tile bytes -> ~4 MiB, which is
    # comfortable on every generation (v5e 16 MiB scoped default, v7x 64 MiB).
    bytes_per_row = lanes * x.dtype.itemsize
    target_tile_bytes = 1 << 20
    tile_r = max(8, (target_tile_bytes // bytes_per_row) // 8 * 8)

    if rows <= tile_r:
        # Small array: one full-extent block (block_shape == array shape is
        # always legal, even if not (8, 128)-aligned).
        out2d = pl.pallas_call(
            _copy_kernel,
            out_shape=jax.ShapeDtypeStruct((rows, lanes), orig_dtype),
            in_specs=[pl.BlockSpec((rows, lanes), lambda: (0, 0))],
            out_specs=pl.BlockSpec((rows, lanes), lambda: (0, 0)),
        )(x2d)
    else:
        grid = (pl.cdiv(rows, tile_r),)
        out2d = pl.pallas_call(
            _copy_kernel,
            out_shape=jax.ShapeDtypeStruct((rows, lanes), orig_dtype),
            grid_spec=pl.GridSpec(
                grid=grid,
                in_specs=[pl.BlockSpec((tile_r, lanes), lambda i: (i, 0))],
                out_specs=pl.BlockSpec((tile_r, lanes), lambda i: (i, 0)),
            ),
            compiler_params=pltpu.CompilerParams(
                dimension_semantics=("parallel",),
            ),
        )(x2d)

    out_flat = out2d.reshape(-1)
    if pad:
        out_flat = out_flat[:total]
    return out_flat.reshape(orig_shape)


if __name__ == "__main__":
    key = jax.random.PRNGKey(0)

    # Primary test: NCHW input at small shape (batch=2, channels=4, 16x16).
    x_small = jax.random.normal(key, (2, 4, 16, 16), dtype=jnp.float32)
    y_small = jax.block_until_ready(sppffm_forward(x_small))
    assert y_small.shape == x_small.shape
    assert y_small.dtype == x_small.dtype
    assert bool(jnp.allclose(y_small, x_small)), "SPPFFM identity mismatch (small)"

    # Secondary test: exercises the lane-dense tiled/grid path (2 MiB, grid > 1).
    x_big = jax.random.normal(key, (2, 16, 128, 128), dtype=jnp.float32)
    y_big = jax.block_until_ready(sppffm_forward(x_big))
    assert y_big.shape == x_big.shape
    assert y_big.dtype == x_big.dtype
    assert bool(jnp.allclose(y_big, x_big)), "SPPFFM identity mismatch (tiled)"

    print("KERNEL_OK")
</pallas_src>

<mosaic_0001>
module attributes {stable_mosaic.version = 11 : i64} {
  func.func @_copy_kernel(%arg0: memref<1x2048xf32, #tpu.memory_space<vmem>>, %arg1: memref<1x2048xf32, #tpu.memory_space<vmem>>) attributes {dimension_semantics = [], scalar_prefetch = 0 : i64, scratch_operands = 0 : i64, tpu.core_type = #tpu.core_type<tc>} {
    %c0 = arith.constant 0 : index
    %c0_0 = arith.constant 0 : index
    %0 = vector.load %arg0[%c0, %c0_0] : memref<1x2048xf32, #tpu.memory_space<vmem>>, vector<1x2048xf32>
    %c0_1 = arith.constant 0 : index
    %c0_2 = arith.constant 0 : index
    %1 = vector.load %arg1[%c0_1, %c0_2] : memref<1x2048xf32, #tpu.memory_space<vmem>>, vector<1x2048xf32>
    tpu.vector_store %arg1[%c0_1, %c0_2], %0 {strides = array<i32>} : memref<1x2048xf32, #tpu.memory_space<vmem>>, vector<1x2048xf32>,
    return
  }
}

</mosaic_0001>

<bundles_post_ra>
// kernel: tpu_custom_call.1
= control target key start
LH: loop header
LB: loop body
LE: loop exit
PB: predicated region body
PF: predicated region fallthrough
CT: control target
= control target key end

     0   :  { %6 = vsyncpa [#allocation3], 0  ;;  %s116_s0 = inlined_call_operand.hbm [shape: f32[1,2048], index: 0, kind: input, shape index: {}]   ;;  %s117_s1 = inlined_call_operand.hbm [shape: f32[1,2048], index: 1, kind: output, shape index: {}]  }
   0x1   :  { %7 = vsyncpa [#allocation4], 0  ;;  %s13_s8 = sshll.u32 %s116_s0, 4  ;;  %s98_s9 = smov [#allocation2]   ;;  %s14_s8 = int_to_ptr.hbm [resolvable:$true] %s13_s8 }
   0x2   :  { %s15_s10 = sshll.u32 %s98_s9, 4  ;;  %s16_s10 = int_to_ptr.vmem [resolvable:$true] %s15_s10 }
   0x3   :  { %18 = dma.hbm_to_vmem [thread:$0]  %s14_s8, 256, %s16_s10, [#allocation3]  }
   0x4   :  { %94 = dma.done.wait [#allocation3], 256  }
   0x5   :  { %95 = vsyncadd [#allocation3], 4294967040  ;;  %s99_s11 = smov [#allocation5]   ;;  %s34_s15 = sshll.u32 %s117_s1, 4  ;;  %v23_v0 = vld [vmem:[#allocation2] sm:$0xff]  ;;  %v24_v1 = vld [vmem:[#allocation2 + $0x8] sm:$0xff]  ;;  %s35_s15 = int_to_ptr.hbm [resolvable:$true] %s34_s15 }
   0x6   :  { %s32_s12 = sshll.u32 %s99_s11, 4  ;;  %25 = vst [vmem:[#allocation5] sm:$0xff] %v23_v0  ;;  %s33_s12 = int_to_ptr.vmem [resolvable:$true] %s32_s12 }
   0x7   :  { %26 = vst [vmem:[#allocation5 + $0x8] sm:$0xff] %v24_v1 }
   0x8   :  { %37 = dma.vmem_to_hbm [thread:$0]  %s33_s12, 256, %s35_s15, [#allocation4]  }
   0x9   :  { %96 = dma.done.wait [#allocation4], 256  }
   0xa   :  { %97 = vsyncadd [#allocation4], 4294967040 }
   0xb   :  { %42 = vsyncpa [#allocation3], 1 }
   0xc   :  { %43 = vsyncpa [#allocation4], 1 }

</bundles_post_ra>
